<compile_context>
chip_gen: v6e
topology: v6e:2x2x1
jax: 0.10.0
libtpu: 0.0.40
codegen_flags: <defaults>
</compile_context>

<pallas_src>
import functools

import jax
import jax.numpy as jnp
from jax.experimental import pallas as pl
from jax.experimental.pallas import tpu as pltpu


def _nse_sqrt_loss_kernel(sim_ref, obs_ref, std_ref, loss_ref, acc_ref, *,
                          nearzero, eps):
    """One time-tile of the masked NSE-sqrt loss reduction.

    sim_ref : (ngrid, TILE_T) f32 VMEM   simulated flow tile
    obs_ref : (ngrid, TILE_T) f32 VMEM   observed flow tile (NaN => masked out)
    std_ref : (ngrid, 1)      f32 VMEM   per-basin std (broadcast over time)
    loss_ref: (1, 1)          f32 SMEM   scalar output (written at last tile)
    acc_ref : (2,)            f32 SMEM   [running_sum, running_valid_count]
    """
    t = pl.program_id(0)

    @pl.when(t == 0)
    def _init():
        acc_ref[0] = 0.0
        acc_ref[1] = 0.0

    sim = sim_ref[...]                       # (ngrid, TILE_T)
    obs = obs_ref[...]                       # (ngrid, TILE_T)

    # Hoisted divide: one reciprocal per basin (ngrid values) per tile instead
    # of a full-rate divide per element. approx=False keeps exact f32 results;
    # switch to approx=True (EUP vrcp) if the tolerance budget allows.
    inv_std = pl.reciprocal(std_ref[...] + eps, approx=False)   # (ngrid, 1)

    mask = obs == obs                        # True where obs is not NaN
    diff = sim - obs
    sq_res = jnp.sqrt(nearzero + diff * diff)
    # Single select per element; NaNs in the masked-out lanes are dropped.
    contrib = jnp.where(mask, sq_res, 0.0) * inv_std

    acc_ref[0] = acc_ref[0] + jnp.sum(contrib)
    acc_ref[1] = acc_ref[1] + jnp.sum(mask.astype(jnp.float32))

    @pl.when(t == pl.num_programs(0) - 1)
    def _finalize():
        total = acc_ref[0]
        count = acc_ref[1]
        # torch.mean over the masked selection; 0.0 if no valid observations.
        loss_ref[0, 0] = jnp.where(count > 0.0, total / count, 0.0)


def nse_sqrt_loss_batch_flow(sim_gt, obs_gt, std_col,
                             nearzero=1e-5, eps=0.1, tile_t=512):
    """Masked NSE-sqrt loss.

    sim_gt, obs_gt : (ngrid, nt) f32, time on the last (lane) axis.
    std_col        : (ngrid, 1)  f32 per-basin std for this batch.
    """
    ngrid, nt = obs_gt.shape

    # Lane tiles must be a multiple of 128; don't over-pad tiny problems.
    tile_t = max(128, (int(tile_t) // 128) * 128)
    tile_t = min(tile_t, pl.cdiv(nt, 128) * 128)
    nt_pad = pl.cdiv(nt, tile_t) * tile_t
    if nt_pad != nt:
        pad = ((0, 0), (0, nt_pad - nt))
        obs_gt = jnp.pad(obs_gt, pad, constant_values=jnp.nan)  # NaN => masked
        sim_gt = jnp.pad(sim_gt, pad, constant_values=0.0)
    num_tiles = nt_pad // tile_t

    kernel = functools.partial(_nse_sqrt_loss_kernel,
                               nearzero=float(nearzero), eps=float(eps))
    out = pl.pallas_call(
        kernel,
        out_shape=jax.ShapeDtypeStruct((1, 1), jnp.float32),
        grid_spec=pltpu.PrefetchScalarGridSpec(
            num_scalar_prefetch=0,
            grid=(num_tiles,),
            in_specs=[
                pl.BlockSpec((ngrid, tile_t), lambda t: (0, t)),   # sim
                pl.BlockSpec((ngrid, tile_t), lambda t: (0, t)),   # obs
                pl.BlockSpec((ngrid, 1), lambda t: (0, 0)),        # std (pinned)
            ],
            out_specs=pl.BlockSpec(memory_space=pltpu.MemorySpace.SMEM),
            scratch_shapes=[pltpu.SMEM((2,), jnp.float32)],
        ),
        compiler_params=pltpu.CompilerParams(
            dimension_semantics=("arbitrary",)),   # reduction axis
    )(sim_gt, obs_gt, std_col)
    return out[0, 0]


def reference_loss(sim_flow, obs_flow, std_batch, nearzero=1e-5, eps=0.1):
    """Pure-JAX reference mirroring the PyTorch forward ((nt, ngrid) layout)."""
    mask = ~jnp.isnan(obs_flow)
    std_full = jnp.broadcast_to(std_batch[None, :], obs_flow.shape)
    sq_res = jnp.sqrt(nearzero + (sim_flow - obs_flow) ** 2)
    norm_res = jnp.where(mask, sq_res / (std_full + eps), 0.0)
    count = jnp.sum(mask.astype(jnp.float32))
    return jnp.where(count > 0.0, jnp.sum(norm_res) / count, 0.0)


if __name__ == "__main__":
    key = jax.random.PRNGKey(0)
    k1, k2, k3, k4 = jax.random.split(key, 4)

    # Small synthetic problem consistent with the module's forward.
    nt = 16          # time steps (rho)
    ngrid = 8        # basins in this batch
    n_basins = 20    # total basins in the dataset (std array length)
    n_targets = 2    # y_obs last dim; '00060_Mean' is index 0
    target_idx = 0
    NEARZERO = 1e-5
    eps = 0.1

    # Deterministic "parameters": per-basin std array (module __init__ arg).
    std_array = jax.random.uniform(k1, (n_basins,), jnp.float32,
                                   minval=0.5, maxval=2.0)
    igrid = jnp.arange(ngrid, dtype=jnp.int32) * 2   # basins 0,2,4,...,14

    # Synthetic model output and observations.
    y_sim_flow = jax.random.normal(k2, (nt, ngrid, 1), jnp.float32)   # 'flow_sim'
    y_obs = jax.random.normal(k3, (nt, ngrid, n_targets), jnp.float32)

    # Inject NaNs into the observed flow target to exercise masking.
    nan_mask = jax.random.uniform(k4, (nt, ngrid)) < 0.2
    obs_tgt = jnp.where(nan_mask, jnp.nan, y_obs[:, :, target_idx])
    y_obs = y_obs.at[:, :, target_idx].set(obs_tgt)

    # ---- glue (plain JAX): target slice / squeeze / gather of std ----
    obs_flow = y_obs[:, :, target_idx]                 # (nt, ngrid)
    sim_flow = jnp.squeeze(y_sim_flow, axis=-1)        # (nt, ngrid)
    # Lane-dense kernel layout: time on the lane (last) axis. In a real
    # pipeline produce (ngrid, nt) directly instead of transposing here.
    obs_gt = obs_flow.T                                # (ngrid, nt)
    sim_gt = sim_flow.T                                # (ngrid, nt)
    std_col = std_array[igrid][:, None]                # (ngrid, 1)

    # ---- hot path: Pallas kernel ----
    loss = nse_sqrt_loss_batch_flow(sim_gt, obs_gt, std_col,
                                    nearzero=NEARZERO, eps=eps)
    loss = jax.block_until_ready(loss)

    ref = jax.block_until_ready(
        reference_loss(sim_flow, obs_flow, std_array[igrid], NEARZERO, eps))
    assert jnp.allclose(loss, ref, rtol=1e-5, atol=1e-6), (loss, ref)

    # All-NaN observations -> loss must be exactly 0.0 (PyTorch else-branch).
    obs_all_nan = jnp.full_like(obs_gt, jnp.nan)
    loss0 = jax.block_until_ready(
        nse_sqrt_loss_batch_flow(sim_gt, obs_all_nan, std_col,
                                 nearzero=NEARZERO, eps=eps))
    assert float(loss0) == 0.0, loss0

    print("KERNEL_OK")
</pallas_src>

<mosaic_0001>
module attributes {stable_mosaic.version = 11 : i64} {
  func.func @_nse_sqrt_loss_kernel(%arg0: i32, %arg1: memref<8x128xf32, #tpu.memory_space<vmem>>, %arg2: memref<8x128xf32, #tpu.memory_space<vmem>>, %arg3: memref<8x1xf32, #tpu.memory_space<vmem>>, %arg4: memref<1x1xf32, #tpu.memory_space<smem>>, %arg5: memref<2xf32, #tpu.memory_space<smem>>) attributes {dimension_semantics = [#tpu.dimension_semantics<arbitrary>], iteration_bounds = array<i64: 1>, scalar_prefetch = 0 : i64, scratch_operands = 1 : i64, tpu.core_type = #tpu.core_type<tc>, window_params = [{transform_indices = @transform_0, window_bounds = array<i64: 8, 128>}, {transform_indices = @transform_1, window_bounds = array<i64: 8, 128>}, {pipeline_mode = #tpu.pipeline_mode<synchronous>, transform_indices = @transform_2, window_bounds = array<i64: 8, 1>}, {transform_indices = @transform_3, window_bounds = array<i64: 1, 1>}]} {
    %c0_i32 = arith.constant 0 : i32
    %0 = arith.cmpi eq, %arg0, %c0_i32 : i32
    %1 = arith.extui %0 : i1 to i32
    %c0_i32_0 = arith.constant 0 : i32
    %2 = arith.cmpi ne, %1, %c0_i32_0 : i32
    scf.if %2 {
      %cst_15 = arith.constant 0.000000e+00 : f32
      %c0_16 = arith.constant 0 : index
      %38 = memref.load %arg5[%c0_16] : memref<2xf32, #tpu.memory_space<smem>>
      memref.store %cst_15, %arg5[%c0_16] : memref<2xf32, #tpu.memory_space<smem>>
      %cst_17 = arith.constant 0.000000e+00 : f32
      %c1_18 = arith.constant 1 : index
      %39 = memref.load %arg5[%c1_18] : memref<2xf32, #tpu.memory_space<smem>>
      memref.store %cst_17, %arg5[%c1_18] : memref<2xf32, #tpu.memory_space<smem>>
    } else {
    }
    %c0 = arith.constant 0 : index
    %c0_1 = arith.constant 0 : index
    %3 = vector.load %arg1[%c0, %c0_1] : memref<8x128xf32, #tpu.memory_space<vmem>>, vector<8x128xf32>
    %c0_2 = arith.constant 0 : index
    %c0_3 = arith.constant 0 : index
    %4 = vector.load %arg2[%c0_2, %c0_3] : memref<8x128xf32, #tpu.memory_space<vmem>>, vector<8x128xf32>
    %c0_4 = arith.constant 0 : index
    %c0_5 = arith.constant 0 : index
    %5 = vector.load %arg3[%c0_4, %c0_5] : memref<8x1xf32, #tpu.memory_space<vmem>>, vector<8x1xf32>
    %cst = arith.constant 1.000000e-01 : f32
    %6 = vector.broadcast %cst : f32 to vector<8x1xf32>
    %7 = arith.addf %5, %6 : vector<8x1xf32>
    %8 = tpu.reciprocal %7 : vector<8x1xf32> -> vector<8x1xf32>
    %9 = arith.cmpf oeq, %4, %4 : vector<8x128xf32>
    %10 = arith.subf %3, %4 : vector<8x128xf32>
    %11 = arith.mulf %10, %10 : vector<8x128xf32>
    %cst_6 = arith.constant 9.99999974E-6 : f32
    %12 = vector.broadcast %cst_6 : f32 to vector<8x128xf32>
    %13 = arith.addf %12, %11 : vector<8x128xf32>
    %14 = math.sqrt %13 : vector<8x128xf32>
    %cst_7 = arith.constant 0.000000e+00 : f32
    %15 = vector.broadcast %cst_7 : f32 to vector<8x128xf32>
    %16 = arith.select %9, %14, %15 : vector<8x128xi1>, vector<8x128xf32>
    %17 = vector.broadcast %8 : vector<8x1xf32> to vector<8x128xf32>
    %18 = arith.mulf %16, %17 : vector<8x128xf32>
    %c0_8 = arith.constant 0 : index
    %19 = memref.load %arg5[%c0_8] : memref<2xf32, #tpu.memory_space<smem>>
    %20 = vector.shape_cast %18 : vector<8x128xf32> to vector<1x8x128xf32>
    %cst_9 = arith.constant dense<0.000000e+00> : vector<1xf32>
    %21 = vector.multi_reduction <add>, %20, %cst_9 [1, 2] : vector<1x8x128xf32> to vector<1xf32>
    %22 = vector.shape_cast %21 : vector<1xf32> to vector<1x1x1xf32>
    %23 = vector.extract %22[0, 0, 0] : f32 from vector<1x1x1xf32>
    %24 = arith.addf %19, %23 : f32
    %c0_10 = arith.constant 0 : index
    %25 = memref.load %arg5[%c0_10] : memref<2xf32, #tpu.memory_space<smem>>
    memref.store %24, %arg5[%c0_10] : memref<2xf32, #tpu.memory_space<smem>>
    %c1 = arith.constant 1 : index
    %26 = memref.load %arg5[%c1] : memref<2xf32, #tpu.memory_space<smem>>
    %27 = arith.extui %9 : vector<8x128xi1> to vector<8x128xi32>
    %28 = arith.sitofp %27 : vector<8x128xi32> to vector<8x128xf32>
    %29 = vector.shape_cast %28 : vector<8x128xf32> to vector<1x8x128xf32>
    %cst_11 = arith.constant dense<0.000000e+00> : vector<1xf32>
    %30 = vector.multi_reduction <add>, %29, %cst_11 [1, 2] : vector<1x8x128xf32> to vector<1xf32>
    %31 = vector.shape_cast %30 : vector<1xf32> to vector<1x1x1xf32>
    %32 = vector.extract %31[0, 0, 0] : f32 from vector<1x1x1xf32>
    %33 = arith.addf %26, %32 : f32
    %c1_12 = arith.constant 1 : index
    %34 = memref.load %arg5[%c1_12] : memref<2xf32, #tpu.memory_space<smem>>
    memref.store %33, %arg5[%c1_12] : memref<2xf32, #tpu.memory_space<smem>>
    %c0_i32_13 = arith.constant 0 : i32
    %35 = arith.cmpi eq, %arg0, %c0_i32_13 : i32
    %36 = arith.extui %35 : i1 to i32
    %c0_i32_14 = arith.constant 0 : i32
    %37 = arith.cmpi ne, %36, %c0_i32_14 : i32
    scf.if %37 {
      %c0_15 = arith.constant 0 : index
      %38 = memref.load %arg5[%c0_15] : memref<2xf32, #tpu.memory_space<smem>>
      %c1_16 = arith.constant 1 : index
      %39 = memref.load %arg5[%c1_16] : memref<2xf32, #tpu.memory_space<smem>>
      %cst_17 = arith.constant 0.000000e+00 : f32
      %40 = arith.cmpf ogt, %39, %cst_17 : f32
      %41 = arith.divf %38, %39 : f32
      %cst_18 = arith.constant 0.000000e+00 : f32
      %42 = arith.select %40, %41, %cst_18 : f32
      %c0_19 = arith.constant 0 : index
      %c0_20 = arith.constant 0 : index
      %43 = memref.load %arg4[%c0_19, %c0_20] : memref<1x1xf32, #tpu.memory_space<smem>>
      memref.store %42, %arg4[%c0_19, %c0_20] : memref<1x1xf32, #tpu.memory_space<smem>>
    } else {
    }
    return
  }
  func.func @transform_0(%arg0: i32) -> (i32, i32) {
    %c0_i32 = arith.constant 0 : i32
    %c0_i32_0 = arith.constant 0 : i32
    return %c0_i32, %arg0 : i32, i32
  }
  func.func @transform_1(%arg0: i32) -> (i32, i32) {
    %c0_i32 = arith.constant 0 : i32
    %c0_i32_0 = arith.constant 0 : i32
    return %c0_i32, %arg0 : i32, i32
  }
  func.func @transform_2(%arg0: i32) -> (i32, i32) {
    %c0_i32 = arith.constant 0 : i32
    %c0_i32_0 = arith.constant 0 : i32
    %c0_i32_1 = arith.constant 0 : i32
    return %c0_i32, %c0_i32_0 : i32, i32
  }
  func.func @transform_3(%arg0: i32) -> (i32, i32) {
    %c0_i32 = arith.constant 0 : i32
    %c0_i32_0 = arith.constant 0 : i32
    %c0_i32_1 = arith.constant 0 : i32
    return %c0_i32, %c0_i32_0 : i32, i32
  }
}

</mosaic_0001>

<bundles_post_ra>
// kernel: tpu_custom_call.1
= control target key start
LH: loop header
LB: loop body
LE: loop exit
PB: predicated region body
PF: predicated region fallthrough
CT: control target
= control target key end

     0   :  { %8 = vsyncpa [#allocation4], 0  ;;  %s203_s0 = inlined_call_operand.vmem [shape: f32[8,128], index: 0, kind: input, shape index: {}]   ;;  %s204_s1 = inlined_call_operand.hbm [shape: f32[8,128], index: 1, kind: input, shape index: {}]   ;;  %s205_s2 = inlined_call_operand.vmem [shape: f32[8,1], index: 2, kind: input, shape index: {}]   ;;  %s206_s3 = inlined_call_operand.hbm [shape: f32[1,1], index: 3, kind: output, shape index: {}]  }
   0x1   :  { %9 = vsyncpa [#allocation5], 0  ;;  %s165_s12 = smov [#allocation3]  }
   0x2   :  { %s18_s13 = sshll.u32 %s165_s12, 4  ;;  %s19_s13 = int_to_ptr.vmem [resolvable:$true] %s18_s13 }
   0x3   :  { %s141_s14 = scalar_lea.vmem %s19_s13, 128  ;;  %p146_p1 = scmp.lt.s32.totalorder %s19_s13, %s19_s13 }
   0x4   :  { %p142_p0 = scmp.ne.s32.totalorder %s19_s13, %s141_s14  ;;  %p147_p2 = scmp.lt.s32.totalorder %s141_s14, %s141_s14 }
   0x6   :  { %p148_p3 = por %p147_p2, %p146_p1 }
   0x8   :  { %p149_p4 = pnand %p148_p3, %p142_p0 }
   0xa   :  { %152 = shalt.err (!%p149_p4)
}
   0xb   :  { %21 = dma.hbm_to_vmem [thread:$0]  %s204_s1, 128, %s19_s13, [#allocation4]  }
   0xc   :  { %161 = dma.done.wait [#allocation4], 128  }
   0xd   :  { %162 = vsyncadd [#allocation4], 4294967168  ;;  %v166_v0 = vmov 0   ;;  %v37_v1 = vld [vmem:[%s205_s2] sm:$0xff]  ;;  %v167_v6 = vmov 0.0   ;;  %s168_s22 = smov [#allocation6]  }
   0xe   :  { %126 = vset.pattern.permute.xlu0 %v166_v0  ;;  %v36_v2 = vld [vmem:[#allocation3] sm:$0xff]  ;;  %v38_v4 = vadd.f32 0.1, %v37_v1 }
   0xf   :  { %v35_v3 = vld [vmem:[%s203_s0] sm:$0xff]  ;;  %vm40_vm0 = vcmp.eq.f32.partialorder %v36_v2, %v36_v2 }
  0x10   :  { %v41_v5 = vsub.f32 %v35_v3, %v36_v2  ;;  %v114_v7 = vsel %vm40_vm0, 1.0, %v167_v6  ;;  %127 = vrcp.f32 %v38_v4 }
  0x11   :  { %74 = vadd.xlane.f32.xlu1 %v114_v7 }
  0x12   :  { %v42_v8 = vmul.f32 %v41_v5, %v41_v5 }
  0x14   :  { %v43_v9 = vadd.f32 1e-05, %v42_v8 }
  0x16   :  { %129 = vrsqrt.f32 %v43_v9  ;;  %vm46_vm1 = vcmp.eq.f32.partialorder %v43_v9, inf  ;;  %v49_v12 = vand.u32 2147483648, %v43_v9  ;;  %vm48_vm2 = vcmp.eq.f32.partialorder %v43_v9, 0.0 }
  0x1d   :  { %v128_v10 = vpop.eup %127 }
  0x1e   :  { %54 = vperm.xlu0 %126, %v128_v10  }
  0x23   :  { %v130_v11 = vpop.eup %129 }
  0x24   :  { %v45_v13 = vmul.f32 %v130_v11, %v43_v9 }
  0x26   :  { %v47_v14 = vsel %vm46_vm1, %v43_v9, %v45_v13 }
  0x27   :  { %v50_v15 = vsel %vm48_vm2, %v49_v12, %v47_v14 }
  0x28   :  { %v51_v16 = vsel %vm40_vm0, %v50_v15, 0.0 }
  0x99   :  { %v55_v17 = vpop.permute.xlu0 %54 }
  0x9a   :  { %v57_v18 = vmul.f32 %v55_v17, %v51_v16  ;;  %v75_v19 = vpop.xlane.xlu1 %74 }
  0x9b   :  { %v76_v20 = vrot.slane %v75_v19, 4 }
  0x9c   :  { %59 = vadd.xlane.f32.xlu0 %v57_v18 }
  0x9d   :  { %v77_v21 = vadd.f32 %v76_v20, %v75_v19 }
  0x9f   :  { %v78_v22 = vrot.slane %v77_v21, 2 }
  0xa1   :  { %v79_v26 = vadd.f32 %v78_v22, %v77_v21 }
  0xa3   :  { %v80_v29 = vrot.slane %v79_v26, 1 }
  0xa5   :  { %v81_v32 = vadd.f32 %v80_v29, %v79_v26 }
 0x125   :  { %v60_v23 = vpop.xlane.xlu0 %59 }
 0x126   :  { %v61_v24 = vrot.slane %v60_v23, 4 }
 0x128   :  { %v62_v25 = vadd.f32 %v61_v24, %v60_v23 }
 0x12a   :  { %v63_v27 = vrot.slane %v62_v25, 2 }
 0x12c   :  { %v64_v28 = vadd.f32 %v63_v27, %v62_v25 }
 0x12e   :  { %v65_v30 = vrot.slane %v64_v28, 1 }
 0x130   :  { %v66_v31 = vadd.f32 %v65_v30, %v64_v28 }
 0x132   :  { %116 = vpush %v66_v31 }
 0x133   :  { %118 = vpush %v81_v32 }
 0x163   :  { %s117_s0 = spop %116 }
 0x164   :  { %s119_s1 = spop %118 }
 0x165   :  { %v92_v33 = vstv %s119_s1  ;;  %p91_p5 = scmp.gt.f32.partialorder %s119_s1, 0.0 }
 0x166   :  { %131 = vrcp.f32 %v92_v33 }
 0x173   :  { %v132_v34 = vpop.eup %131 }
 0x174   :  { %120 = vpush %v132_v34 }
 0x1a5   :  { %s121_s2 = spop %120 }
 0x1a6   :  { %s95_s21 = smul.f32 %s121_s2, %s117_s0 }
 0x1a8   :  { %s208_s21 = smov (!%p91_p5, %s95_s21), 0.0 }
 0x1a9   :  { %98 = sst [smem:[#allocation6]] %s208_s21 }
 0x1aa   :  { %106 = dma.smem_to_hbm %s168_s22, 16, %s206_s3, [#allocation5]  }
 0x1ab   :  { %163 = dma.done.wait [#allocation5], 16  }
 0x1ac   :  { %164 = vsyncadd [#allocation5], 4294967280 }
 0x1ad   :  { %110 = sfence }
 0x1ae   :  { %111 = vsyncpa [#allocation4], 1 }
 0x1af   :  { %112 = vsyncpa [#allocation5], 1 }

</bundles_post_ra>
